<compile_context>
chip_gen: v6e
topology: v6e:2x2x1
jax: 0.10.0
libtpu: 0.0.40
codegen_flags: <defaults>
</compile_context>

<pallas_src>
import jax
import jax.numpy as jnp
from jax.experimental import pallas as pl
from jax.experimental.pallas import tpu as pltpu


def _round_up(x, m):
    return ((x + m - 1) // m) * m


# Resident contraction-side E (bf16) is capped so that even a double-buffered copy plus
# all per-step tiles stays well under v7x's 64 MiB/TC VMEM.
_RESIDENT_E_BYTES_MAX = 12 * 1024 * 1024


def _tile_sizes(N, tm, tk):
    """Clamp tiles to the problem size; keep int8-friendly (32,128) alignment and
    prefer >=2 row tiles so v7x's two TensorCores both get work on the parallel axis."""
    tm = max(32, min(tm, _round_up(N, 32)))
    tk = max(128, min(tk, _round_up(N, 128)))
    two_tile_tm = _round_up(max((N + 1) // 2, 32), 32)
    if two_tile_tm < tm:
        tm = two_tile_tm
    return tm, tk


def prepare_kgnn_graph(adj, *, tm=512, tk=1024):
    """One-time O(N^2) graph preprocessing (reuse across forward calls on the same graph):
    pad the adjacency to tile multiples, cast it to int8 (exact for 0/1 edges, 1 B/elem
    in HBM), and precompute node degrees as a small f32 [n_rows, 1] vector."""
    N = adj.shape[0]
    tm, tk = _tile_sizes(N, tm, tk)
    n_rows = _round_up(N, tm)
    n_cols = _round_up(N, tk)
    adj_i8 = jnp.zeros((n_rows, n_cols), jnp.int8).at[:N, :N].set(adj.astype(jnp.int8))
    deg = jnp.zeros((n_rows, 1), jnp.float32).at[:N, :].set(
        adj.astype(jnp.float32).sum(axis=-1, keepdims=True))
    return adj_i8, deg


def _make_kgnn_kernel(resident_e, tk):
    """Grid = (row_tiles, k_tiles); k (contraction over neighbors) is innermost."""

    def kernel(e_row_ref, deg_ref, adj_ref, e_k_ref,
               w1_ref, b1_ref, w2_ref, b2_ref, o_ref, acc_ref):
        k = pl.program_id(1)

        # --- init the f32 accumulator at the start of each row tile's K loop ---
        @pl.when(k == 0)
        def _():
            acc_ref[...] = jnp.zeros_like(acc_ref)

        # --- accumulate neighbor sums for this K tile ---
        # int8 0/1 adjacency -> bf16 on the VPU (lossless, hidden under the MXU);
        # bf16 x bf16 hits the fast MXU path with f32 accumulation.
        adj = adj_ref[...].astype(jnp.bfloat16)
        if resident_e:
            # E_k is fully VMEM-resident; slice the current contraction window.
            off = pl.multiple_of(k * tk, tk)
            e_k = e_k_ref[pl.ds(off, tk), :]
        else:
            e_k = e_k_ref[...]
        acc_ref[...] += jnp.dot(adj, e_k, preferred_element_type=jnp.float32)

        # --- finalize: mean / self-fallback, combine, dense layers, lane-dense store ---
        @pl.when(k == pl.num_programs(1) - 1)
        def _():
            e = e_row_ref[...]                                  # [tm, D] f32
            deg = deg_ref[...]                                  # [tm, 1] f32 (precomputed)
            inv = 1.0 / jnp.maximum(deg, 1.0)                   # exact; finalize-only
            agg = jnp.where(deg > 0.0, acc_ref[...] * inv, e)   # mean or self-fallback
            combined = e + agg                                  # combinar_embeddings_soma
            h = jnp.dot(combined, w1_ref[...],
                        preferred_element_type=jnp.float32) + b1_ref[...]
            h = jnp.maximum(h, 0.0)                             # ReLU
            out = jnp.dot(h, w2_ref[...],
                          preferred_element_type=jnp.float32) + b2_ref[...]
            o_ref[...] = out.astype(o_ref.dtype)

    return kernel


def kgnn_forward(embeddings, adj, w1, b1, w2, b2, *, tm=512, tk=1024,
                 prepared_graph=None, resident_e=None):
    """embeddings [N,D], adj [N,N] (0/1), w1 [D,H], b1 [1,H], w2 [H,O], b2 [1,O]."""
    N, D = embeddings.shape
    H = w1.shape[1]
    O = w2.shape[1]

    tm, tk = _tile_sizes(N, tm, tk)
    n_rows = _round_up(N, tm)       # padded row count (output / adj rows)
    n_cols = _round_up(N, tk)       # padded contraction count (adj cols / E_k rows)
    d_pad = _round_up(D, 128)
    h_pad = _round_up(H, 128)
    o_pad = _round_up(O, 128)       # lane-dense output: 64 -> 128

    # --- graph-side inputs (O(N^2)): prefer a pre-prepared, reusable copy -------------
    adj_i8 = deg = None
    if prepared_graph is not None:
        adj_i8, deg = prepared_graph
        if adj_i8.shape != (n_rows, n_cols) or deg.shape != (n_rows, 1):
            adj_i8 = deg = None     # shape/tiling mismatch -> re-prepare
    if adj_i8 is None:
        # TODO(synk): for repeated forward passes on the same graph, hoist this O(N^2)
        #             pad+cast out of the call by passing prepared_graph=.
        adj_i8, deg = prepare_kgnn_graph(adj, tm=tm, tk=tk)

    # --- node-side inputs (O(N*D), negligible vs the adjacency) -----------------------
    f32 = jnp.float32
    e32 = embeddings.astype(f32)
    # Row-side E stays f32 (self-fallback / combine accuracy); contraction-side E is
    # bf16 so the adjacency contraction runs on the bf16xbf16 MXU fast path.
    e_row = jnp.zeros((n_rows, d_pad), f32).at[:N, :D].set(e32)
    e_k = jnp.zeros((n_cols, d_pad), jnp.bfloat16).at[:N, :D].set(
        e32.astype(jnp.bfloat16))
    w1_p = jnp.zeros((d_pad, h_pad), f32).at[:D, :H].set(w1.astype(f32))
    b1_p = jnp.zeros((1, h_pad), f32).at[:, :H].set(b1.astype(f32))
    w2_p = jnp.zeros((h_pad, o_pad), f32).at[:H, :O].set(w2.astype(f32))
    b2_p = jnp.zeros((1, o_pad), f32).at[:, :O].set(b2.astype(f32))

    # Resident E_k when it fits (fetched from HBM once); tiled fallback otherwise.
    if resident_e is None:
        resident_e = n_cols * d_pad * 2 <= _RESIDENT_E_BYTES_MAX
    if resident_e:
        e_k_spec = pl.BlockSpec((n_cols, d_pad), lambda i, k: (0, 0))
    else:
        e_k_spec = pl.BlockSpec((tk, d_pad), lambda i, k: (k, 0))

    grid = (n_rows // tm, n_cols // tk)

    out_padded = pl.pallas_call(
        _make_kgnn_kernel(resident_e, tk),
        out_shape=jax.ShapeDtypeStruct((n_rows, o_pad), f32),
        grid_spec=pltpu.PrefetchScalarGridSpec(
            num_scalar_prefetch=0,
            grid=grid,
            in_specs=[
                pl.BlockSpec((tm, d_pad), lambda i, k: (i, 0)),     # E row tile (f32)
                pl.BlockSpec((tm, 1), lambda i, k: (i, 0)),         # precomputed degrees
                # NOTE: if a profile shows exposed DMA on this (only) big per-step
                # stream, add pipeline_mode=pl.Buffered(3) here instead of shrinking tk.
                pl.BlockSpec((tm, tk), lambda i, k: (i, k)),        # adjacency tile (int8)
                e_k_spec,                                           # E contraction (bf16)
                pl.BlockSpec((d_pad, h_pad), lambda i, k: (0, 0)),  # W1 (resident)
                pl.BlockSpec((1, h_pad), lambda i, k: (0, 0)),      # b1
                pl.BlockSpec((h_pad, o_pad), lambda i, k: (0, 0)),  # W2 (resident)
                pl.BlockSpec((1, o_pad), lambda i, k: (0, 0)),      # b2
            ],
            out_specs=pl.BlockSpec((tm, o_pad), lambda i, k: (i, 0)),
            scratch_shapes=[
                pltpu.VMEM((tm, d_pad), jnp.float32),  # neighbor-sum accumulator
            ],
        ),
        compiler_params=pltpu.CompilerParams(
            # Row axis shards across v7x's 2 TensorCores; K axis is a reduction.
            dimension_semantics=("parallel", "arbitrary"),
            # Worst case at default tiles + resident-E cap is ~30 MiB; 40 MiB leaves
            # headroom and stays safely under v7x's 64 MiB/TC (128 MiB on v5e/v6e).
            vmem_limit_bytes=40 * 1024 * 1024,
        ),
    )(e_row, deg, adj_i8, e_k, w1_p, b1_p, w2_p, b2_p)

    return out_padded[:N, :O]


def kgnn_reference(embeddings, adj, w1, b1, w2, b2):
    """Pure-f32 reference matching the PyTorch module semantics."""
    agg_sum = adj @ embeddings
    deg = adj.sum(axis=-1, keepdims=True)
    agg = jnp.where(deg > 0.0, agg_sum / jnp.maximum(deg, 1.0), embeddings)
    combined = embeddings + agg
    h = jnp.maximum(combined @ w1 + b1, 0.0)
    return h @ w2 + b2


def kgnn_reference_matched(embeddings, adj, w1, b1, w2, b2):
    """Same, but with contraction-side embeddings rounded to bf16 like the kernel's
    MXU inputs (accumulation stays f32) -> tight cross-check of the kernel itself."""
    e_bf = embeddings.astype(jnp.bfloat16).astype(jnp.float32)
    agg_sum = adj @ e_bf
    deg = adj.sum(axis=-1, keepdims=True)
    agg = jnp.where(deg > 0.0, agg_sum / jnp.maximum(deg, 1.0), embeddings)
    combined = embeddings + agg
    h = jnp.maximum(combined @ w1 + b1, 0.0)
    return h @ w2 + b2


def _make_inputs(key, N, D, H, O):
    k_e, k_adj, k_w1, k_b1, k_w2, k_b2 = jax.random.split(key, 6)
    embeddings = jax.random.normal(k_e, (N, D), dtype=jnp.float32)
    # Synthetic adjacency: no self-loops; some isolated nodes exercise the fallback.
    adj = (jax.random.uniform(k_adj, (N, N)) > 0.6).astype(jnp.float32)
    adj = adj * (1.0 - jnp.eye(N, dtype=jnp.float32))
    w1 = jax.random.normal(k_w1, (D, H), dtype=jnp.float32) * (1.0 / jnp.sqrt(D))
    b1 = jax.random.normal(k_b1, (1, H), dtype=jnp.float32) * 0.01
    w2 = jax.random.normal(k_w2, (H, O), dtype=jnp.float32) * (1.0 / jnp.sqrt(H))
    b2 = jax.random.normal(k_b2, (1, O), dtype=jnp.float32) * 0.01
    return embeddings, adj, w1, b1, w2, b2


if __name__ == "__main__":
    # Shapes implied by the forward pass: D = 384 (SentenceTransformer MiniLM dim),
    # hidden = 128, output = 64.  N = number of graph nodes.
    D, H, O = 384, 128, 64
    key = jax.random.PRNGKey(0)

    def check(out, e, a, w1, b1, w2, b2, name):
        ref_f32 = kgnn_reference(e, a, w1, b1, w2, b2)
        ref_match = kgnn_reference_matched(e, a, w1, b1, w2, b2)
        # bf16 contraction-side E -> ~1e-3 rel. error vs the pure-f32 reference.
        assert jnp.allclose(out, ref_f32, atol=3e-2, rtol=3e-2), f"f32 mismatch ({name})"
        assert jnp.allclose(out, ref_match, atol=1e-4, rtol=1e-4), f"matched mismatch ({name})"

    # Test 1: toy graph (N=8) -> single grid step after padding; default tiles.
    e8, a8, w1, b1, w2, b2 = _make_inputs(key, 8, D, H, O)
    out8 = jax.block_until_ready(kgnn_forward(e8, a8, w1, b1, w2, b2))
    assert out8.shape == (8, O), out8.shape
    check(out8, e8, a8, w1, b1, w2, b2, "N=8")

    # Test 2: larger graph, small tiles -> multi-tile row/K accumulation, resident-E
    # slicing, deg==0 fallback, and reuse of a pre-prepared (padded int8) adjacency.
    e2, a2, w1b, b1b, w2b, b2b = _make_inputs(jax.random.PRNGKey(1), 200, D, H, O)
    prep = prepare_kgnn_graph(a2, tm=64, tk=128)   # one-time O(N^2) prep, reusable
    out2 = jax.block_until_ready(
        kgnn_forward(e2, a2, w1b, b1b, w2b, b2b, tm=64, tk=128, prepared_graph=prep))
    assert out2.shape == (200, O), out2.shape
    check(out2, e2, a2, w1b, b1b, w2b, b2b, "N=200")

    # Test 3: force the non-resident (tiled E_k) fallback path used when the graph is
    # too large for VMEM-resident embeddings.
    e3, a3, w1c, b1c, w2c, b2c = _make_inputs(jax.random.PRNGKey(2), 100, D, H, O)
    out3 = jax.block_until_ready(
        kgnn_forward(e3, a3, w1c, b1c, w2c, b2c, tm=64, tk=128, resident_e=False))
    assert out3.shape == (100, O), out3.shape
    check(out3, e3, a3, w1c, b1c, w2c, b2c, "N=100 tiled-Ek")

    print("KERNEL_OK")
</pallas_src>

<mosaic_0001>
module attributes {stable_mosaic.version = 11 : i64} {
  func.func @kernel(%arg0: i32, %arg1: i32, %arg2: memref<32x384xf32, #tpu.memory_space<vmem>>, %arg3: memref<32x1xf32, #tpu.memory_space<vmem>>, %arg4: memref<32x128xi8, #tpu.memory_space<vmem>>, %arg5: memref<128x384xbf16, #tpu.memory_space<vmem>>, %arg6: memref<384x128xf32, #tpu.memory_space<vmem>>, %arg7: memref<1x128xf32, #tpu.memory_space<vmem>>, %arg8: memref<128x128xf32, #tpu.memory_space<vmem>>, %arg9: memref<1x128xf32, #tpu.memory_space<vmem>>, %arg10: memref<32x128xf32, #tpu.memory_space<vmem>>, %arg11: memref<32x384xf32, #tpu.memory_space<vmem>>) attributes {dimension_semantics = [#tpu.dimension_semantics<parallel>, #tpu.dimension_semantics<arbitrary>], iteration_bounds = array<i64: 1, 1>, scalar_prefetch = 0 : i64, scratch_operands = 1 : i64, tpu.core_type = #tpu.core_type<tc>, window_params = [{transform_indices = @transform_0, window_bounds = array<i64: 32, 384>}, {transform_indices = @transform_1, window_bounds = array<i64: 32, 1>}, {transform_indices = @transform_2, window_bounds = array<i64: 32, 128>}, {pipeline_mode = #tpu.pipeline_mode<synchronous>, transform_indices = @transform_3, window_bounds = array<i64: 128, 384>}, {pipeline_mode = #tpu.pipeline_mode<synchronous>, transform_indices = @transform_4, window_bounds = array<i64: 384, 128>}, {pipeline_mode = #tpu.pipeline_mode<synchronous>, transform_indices = @transform_5, window_bounds = array<i64: 1, 128>}, {pipeline_mode = #tpu.pipeline_mode<synchronous>, transform_indices = @transform_6, window_bounds = array<i64: 128, 128>}, {pipeline_mode = #tpu.pipeline_mode<synchronous>, transform_indices = @transform_7, window_bounds = array<i64: 1, 128>}, {transform_indices = @transform_8, window_bounds = array<i64: 32, 128>}]} {
    %c0_i32 = arith.constant 0 : i32
    %0 = arith.cmpi eq, %arg1, %c0_i32 : i32
    %1 = arith.extui %0 : i1 to i32
    %c0_i32_0 = arith.constant 0 : i32
    %2 = arith.cmpi ne, %1, %c0_i32_0 : i32
    scf.if %2 {
      %cst_9 = arith.constant 0.000000e+00 : f32
      %16 = vector.broadcast %cst_9 : f32 to vector<32x384xf32>
      %c0_10 = arith.constant 0 : index
      %c0_11 = arith.constant 0 : index
      %17 = vector.load %arg11[%c0_10, %c0_11] : memref<32x384xf32, #tpu.memory_space<vmem>>, vector<32x384xf32>
      tpu.vector_store %arg11[%c0_10, %c0_11], %16 {strides = array<i32>} : memref<32x384xf32, #tpu.memory_space<vmem>>, vector<32x384xf32>,
    } else {
    }
    %c0 = arith.constant 0 : index
    %c0_1 = arith.constant 0 : index
    %3 = vector.load %arg4[%c0, %c0_1] : memref<32x128xi8, #tpu.memory_space<vmem>>, vector<32x128xi8>
    %4 = arith.sitofp %3 : vector<32x128xi8> to vector<32x128xbf16>
    %c128_i32 = arith.constant 128 : i32
    %5 = arith.muli %arg1, %c128_i32 : i32
    %6 = tpu.assume_multiple %5, 128 : i32
    %7 = arith.index_cast %6 : i32 to index
    %c0_2 = arith.constant 0 : index
    %8 = vector.load %arg5[%7, %c0_2] : memref<128x384xbf16, #tpu.memory_space<vmem>>, vector<128x384xbf16>
    %c0_3 = arith.constant 0 : index
    %c0_4 = arith.constant 0 : index
    %9 = vector.load %arg11[%c0_3, %c0_4] : memref<32x384xf32, #tpu.memory_space<vmem>>, vector<32x384xf32>
    %cst = arith.constant dense<0.000000e+00> : vector<32x384xf32>
    %10 = tpu.matmul %4, %8, %cst {dimension_numbers = #tpu.dot_dimension_numbers<[1], [0], [0], [1], [0, 0, 1, 1], [], []>} : vector<32x128xbf16>, vector<128x384xbf16>, vector<32x384xf32> -> vector<32x384xf32>
    %11 = arith.addf %9, %10 : vector<32x384xf32>
    %c0_5 = arith.constant 0 : index
    %c0_6 = arith.constant 0 : index
    %12 = vector.load %arg11[%c0_5, %c0_6] : memref<32x384xf32, #tpu.memory_space<vmem>>, vector<32x384xf32>
    tpu.vector_store %arg11[%c0_5, %c0_6], %11 {strides = array<i32>} : memref<32x384xf32, #tpu.memory_space<vmem>>, vector<32x384xf32>,
    %c0_i32_7 = arith.constant 0 : i32
    %13 = arith.cmpi eq, %arg1, %c0_i32_7 : i32
    %14 = arith.extui %13 : i1 to i32
    %c0_i32_8 = arith.constant 0 : i32
    %15 = arith.cmpi ne, %14, %c0_i32_8 : i32
    scf.if %15 {
      %c0_9 = arith.constant 0 : index
      %c0_10 = arith.constant 0 : index
      %16 = vector.load %arg2[%c0_9, %c0_10] : memref<32x384xf32, #tpu.memory_space<vmem>>, vector<32x384xf32>
      %c0_11 = arith.constant 0 : index
      %c0_12 = arith.constant 0 : index
      %17 = vector.load %arg3[%c0_11, %c0_12] : memref<32x1xf32, #tpu.memory_space<vmem>>, vector<32x1xf32>
      %cst_13 = arith.constant 1.000000e+00 : f32
      %18 = vector.broadcast %cst_13 : f32 to vector<32x1xf32>
      %19 = arith.maximumf %17, %18 : vector<32x1xf32>
      %cst_14 = arith.constant 1.000000e+00 : f32
      %20 = vector.broadcast %cst_14 : f32 to vector<32x1xf32>
      %21 = arith.divf %20, %19 : vector<32x1xf32>
      %cst_15 = arith.constant 0.000000e+00 : f32
      %22 = vector.broadcast %cst_15 : f32 to vector<32x1xf32>
      %23 = arith.cmpf ogt, %17, %22 : vector<32x1xf32>
      %c0_16 = arith.constant 0 : index
      %c0_17 = arith.constant 0 : index
      %24 = vector.load %arg11[%c0_16, %c0_17] : memref<32x384xf32, #tpu.memory_space<vmem>>, vector<32x384xf32>
      %25 = vector.broadcast %21 : vector<32x1xf32> to vector<32x384xf32>
      %26 = arith.mulf %24, %25 : vector<32x384xf32>
      %27 = vector.shape_cast %23 : vector<32x1xi1> to vector<32x1xi1>
      %28 = vector.broadcast %27 : vector<32x1xi1> to vector<32x384xi1>
      %29 = arith.select %28, %26, %16 : vector<32x384xi1>, vector<32x384xf32>
      %30 = arith.addf %16, %29 : vector<32x384xf32>
      %c0_18 = arith.constant 0 : index
      %c0_19 = arith.constant 0 : index
      %31 = vector.load %arg6[%c0_18, %c0_19] : memref<384x128xf32, #tpu.memory_space<vmem>>, vector<384x128xf32>
      %cst_20 = arith.constant dense<0.000000e+00> : vector<32x128xf32>
      %32 = tpu.matmul %30, %31, %cst_20 {dimension_numbers = #tpu.dot_dimension_numbers<[1], [0], [0], [1], [0, 0, 1, 1], [], []>} : vector<32x384xf32>, vector<384x128xf32>, vector<32x128xf32> -> vector<32x128xf32>
      %c0_21 = arith.constant 0 : index
      %c0_22 = arith.constant 0 : index
      %33 = vector.load %arg7[%c0_21, %c0_22] : memref<1x128xf32, #tpu.memory_space<vmem>>, vector<1x128xf32>
      %34 = vector.broadcast %33 : vector<1x128xf32> to vector<32x128xf32>
      %35 = arith.addf %32, %34 : vector<32x128xf32>
      %cst_23 = arith.constant 0.000000e+00 : f32
      %36 = vector.broadcast %cst_23 : f32 to vector<32x128xf32>
      %37 = arith.maximumf %35, %36 : vector<32x128xf32>
      %c0_24 = arith.constant 0 : index
      %c0_25 = arith.constant 0 : index
      %38 = vector.load %arg8[%c0_24, %c0_25] : memref<128x128xf32, #tpu.memory_space<vmem>>, vector<128x128xf32>
      %cst_26 = arith.constant dense<0.000000e+00> : vector<32x128xf32>
      %39 = tpu.matmul %37, %38, %cst_26 {dimension_numbers = #tpu.dot_dimension_numbers<[1], [0], [0], [1], [0, 0, 1, 1], [], []>} : vector<32x128xf32>, vector<128x128xf32>, vector<32x128xf32> -> vector<32x128xf32>
      %c0_27 = arith.constant 0 : index
      %c0_28 = arith.constant 0 : index
      %40 = vector.load %arg9[%c0_27, %c0_28] : memref<1x128xf32, #tpu.memory_space<vmem>>, vector<1x128xf32>
      %41 = vector.broadcast %40 : vector<1x128xf32> to vector<32x128xf32>
      %42 = arith.addf %39, %41 : vector<32x128xf32>
      %c0_29 = arith.constant 0 : index
      %c0_30 = arith.constant 0 : index
      %43 = vector.load %arg10[%c0_29, %c0_30] : memref<32x128xf32, #tpu.memory_space<vmem>>, vector<32x128xf32>
      tpu.vector_store %arg10[%c0_29, %c0_30], %42 {strides = array<i32>} : memref<32x128xf32, #tpu.memory_space<vmem>>, vector<32x128xf32>,
    } else {
    }
    return
  }
  func.func @transform_0(%arg0: i32, %arg1: i32) -> (i32, i32) {
    %c0_i32 = arith.constant 0 : i32
    %c0_i32_0 = arith.constant 0 : i32
    return %arg0, %c0_i32 : i32, i32
  }
  func.func @transform_1(%arg0: i32, %arg1: i32) -> (i32, i32) {
    %c0_i32 = arith.constant 0 : i32
    %c0_i32_0 = arith.constant 0 : i32
    return %arg0, %c0_i32 : i32, i32
  }
  func.func @transform_2(%arg0: i32, %arg1: i32) -> (i32, i32) {
    %c0_i32 = arith.constant 0 : i32
    return %arg0, %arg1 : i32, i32
  }
  func.func @transform_3(%arg0: i32, %arg1: i32) -> (i32, i32) {
    %c0_i32 = arith.constant 0 : i32
    %c0_i32_0 = arith.constant 0 : i32
    %c0_i32_1 = arith.constant 0 : i32
    return %c0_i32, %c0_i32_0 : i32, i32
  }
  func.func @transform_4(%arg0: i32, %arg1: i32) -> (i32, i32) {
    %c0_i32 = arith.constant 0 : i32
    %c0_i32_0 = arith.constant 0 : i32
    %c0_i32_1 = arith.constant 0 : i32
    return %c0_i32, %c0_i32_0 : i32, i32
  }
  func.func @transform_5(%arg0: i32, %arg1: i32) -> (i32, i32) {
    %c0_i32 = arith.constant 0 : i32
    %c0_i32_0 = arith.constant 0 : i32
    %c0_i32_1 = arith.constant 0 : i32
    return %c0_i32, %c0_i32_0 : i32, i32
  }
  func.func @transform_6(%arg0: i32, %arg1: i32) -> (i32, i32) {
    %c0_i32 = arith.constant 0 : i32
    %c0_i32_0 = arith.constant 0 : i32
    %c0_i32_1 = arith.constant 0 : i32
    return %c0_i32, %c0_i32_0 : i32, i32
  }
  func.func @transform_7(%arg0: i32, %arg1: i32) -> (i32, i32) {
    %c0_i32 = arith.constant 0 : i32
    %c0_i32_0 = arith.constant 0 : i32
    %c0_i32_1 = arith.constant 0 : i32
    return %c0_i32, %c0_i32_0 : i32, i32
  }
  func.func @transform_8(%arg0: i32, %arg1: i32) -> (i32, i32) {
    %c0_i32 = arith.constant 0 : i32
    %c0_i32_0 = arith.constant 0 : i32
    return %arg0, %c0_i32 : i32, i32
  }
}

</mosaic_0001>

<bundles_post_ra>
// kernel: tpu_custom_call.1
= control target key start
LH: loop header
LB: loop body
LE: loop exit
PB: predicated region body
PF: predicated region fallthrough
CT: control target
= control target key end

     0   :  { %13 = vsyncpa [#allocation4], 0  ;;  %s1443_s0 = inlined_call_operand.hbm [shape: f32[32,384], index: 0, kind: input, shape index: {}]   ;;  %s1444_s1 = inlined_call_operand.vmem [shape: f32[32,1], index: 1, kind: input, shape index: {}]   ;;  %s1445_s2 = inlined_call_operand.vmem [shape: s8[32,128], index: 2, kind: input, shape index: {}]   ;;  %s1446_s3 = inlined_call_operand.hbm [shape: bf16[128,384], index: 3, kind: input, shape index: {}]   ;;  %s1447_s4 = inlined_call_operand.hbm [shape: f32[384,128], index: 4, kind: input, shape index: {}]   ;;  %s1448_s5 = inlined_call_operand.vmem [shape: f32[1,128], index: 5, kind: input, shape index: {}]   ;;  %s1449_s6 = inlined_call_operand.hbm [shape: f32[128,128], index: 6, kind: input, shape index: {}]   ;;  %s1450_s7 = inlined_call_operand.vmem [shape: f32[1,128], index: 7, kind: input, shape index: {}]   ;;  %s1451_s8 = inlined_call_operand.hbm [shape: f32[32,128], index: 8, kind: output, shape index: {}]  }
   0x1   :  { %14 = vsyncpa [#allocation7], 0 }
   0x2   :  { %15 = vsyncpa [#allocation10], 0 }
   0x3   :  { %16 = vsyncpa [#allocation5], 0  ;;  %s1304_s27 = smov [#allocation6]  }
   0x4   :  { %s38_s28 = sshll.u32 %s1304_s27, 4  ;;  %s39_s28 = int_to_ptr.vmem [resolvable:$true] %s38_s28 }
   0x5   :  { %s1204_s29 = scalar_lea.vmem %s39_s28, 3072  ;;  %p1209_p1 = scmp.lt.s32.totalorder %s39_s28, %s39_s28 }
   0x6   :  { %p1205_p0 = scmp.ne.s32.totalorder %s39_s28, %s1204_s29  ;;  %p1210_p2 = scmp.lt.s32.totalorder %s1204_s29, %s1204_s29 }
   0x8   :  { %p1211_p3 = por %p1210_p2, %p1209_p1 }
   0xa   :  { %p1212_p4 = pnand %p1211_p3, %p1205_p0 }
   0xc   :  { %1215 = shalt.err (!%p1212_p4)
}
   0xd   :  { %s1305_s30 = smov 192   ;;  %s1306_s9 = smov 12  }
   0xe   :  { %44 = dma.hbm_to_vmem [thread:$0]  %s1446_s3, 3072, %s39_s28, [#allocation7], %s1305_s30, %s1305_s30, %s1306_s9  }
   0xf   :  { %s1307_s12 = smov [#allocation3]  }
  0x10   :  { %s22_s13 = sshll.u32 %s1307_s12, 4  ;;  %s23_s13 = int_to_ptr.vmem [resolvable:$true] %s22_s13 }
  0x11   :  { %s1224_s14 = scalar_lea.vmem %s23_s13, 1536  ;;  %p1229_p6 = scmp.lt.s32.totalorder %s23_s13, %s23_s13 }
  0x12   :  { %p1225_p5 = scmp.ne.s32.totalorder %s23_s13, %s1224_s14  ;;  %p1230_p7 = scmp.lt.s32.totalorder %s1224_s14, %s1224_s14 }
  0x14   :  { %p1231_p8 = por %p1230_p7, %p1229_p6 }
  0x16   :  { %p1232_p9 = pnand %p1231_p8, %p1225_p5 }
  0x18   :  { %1235 = shalt.err (!%p1232_p9)
}
  0x19   :  { %s1308_s15 = smov 384   ;;  %s1309_s16 = smov 24  }
  0x1a   :  { %28 = dma.hbm_to_vmem [thread:$0]  %s1443_s0, 1536, %s23_s13, [#allocation4], %s1308_s15, %s1308_s15, %s1309_s16  }
  0x1b   :  { %s1310_s19 = smov [#allocation8]  }
  0x1c   :  { %s50_s20 = sshll.u32 %s1310_s19, 4  ;;  %s51_s20 = int_to_ptr.vmem [resolvable:$true] %s50_s20 }
  0x1d   :  { %s1244_s3 = scalar_lea.vmem %s51_s20, 6144  ;;  %p1249_p11 = scmp.lt.s32.totalorder %s51_s20, %s51_s20 }
  0x1e   :  { %p1245_p10 = scmp.ne.s32.totalorder %s51_s20, %s1244_s3  ;;  %p1250_p12 = scmp.lt.s32.totalorder %s1244_s3, %s1244_s3 }
  0x20   :  { %p1251_p13 = por %p1250_p12, %p1249_p11 }
  0x22   :  { %p1252_p0 = pnand %p1251_p13, %p1245_p10 }
  0x24   :  { %1255 = shalt.err (!%p1252_p0)
}
  0x25   :  { %s1311_s21 = smov 128   ;;  %s1312_s22 = smov 8  }
  0x26   :  { %56 = dma.hbm_to_vmem [thread:$0]  %s1447_s4, 6144, %s51_s20, [#allocation7], %s1311_s21, %s1311_s21, %s1312_s22  }
  0x27   :  { %s1313_s0 = smov [#allocation9]  }
  0x28   :  { %s64_s25 = sshll.u32 %s1313_s0, 4  ;;  %s65_s25 = int_to_ptr.vmem [resolvable:$true] %s64_s25 }
  0x29   :  { %s1264_s26 = scalar_lea.vmem %s65_s25, 2048  ;;  %p1269_p2 = scmp.lt.s32.totalorder %s65_s25, %s65_s25 }
  0x2a   :  { %p1265_p1 = scmp.ne.s32.totalorder %s65_s25, %s1264_s26  ;;  %p1270_p3 = scmp.lt.s32.totalorder %s1264_s26, %s1264_s26 }
  0x2c   :  { %p1271_p4 = por %p1270_p3, %p1269_p2 }
  0x2e   :  { %p1272_p5 = pnand %p1271_p4, %p1265_p1 }
  0x30   :  { %1275 = shalt.err (!%p1272_p5)
}
  0x31   :  { %70 = dma.hbm_to_vmem [thread:$0]  %s1449_s6, 2048, %s65_s25, [#allocation10], %s1311_s21, %s1311_s21, %s1312_s22  }
  0x32   :  { %1296 = dma.done.wait [#allocation4], 1536  }
  0x33   :  { %1297 = vsyncadd [#allocation4], 4294965760 }
  0x34   :  { %1298 = dma.done.wait [#allocation7], 9216  }
  0x35   :  { %1299 = vsyncadd [#allocation7], 4294958080 }
  0x36   :  { %1300 = dma.done.wait [#allocation10], 2048  }
  0x37   :  { %1301 = vsyncadd [#allocation10], 4294965248  ;;  %v1314_v0 = vmov 0   ;;  %v1156_v1 = vld [vmem:[#allocation6 + $0xac] ss:$12 sps:$4 sm:$0xff]   ;;  %v1385_v18 = vld [vmem:[%s1445_s2] sm:$0xff] }
  0x38   :  { %315 = vmatprep.mubr.bf16.mxu0 %v1314_v0  ;;  %1154 = vset.pattern.permute.xlu0 %v1314_v0  ;;  %v1158_v2 = vld [vmem:[#allocation6 + $0xb0] ss:$12 sps:$4 sm:$0xff]   ;;  %v1159_v3 = vld [vmem:[#allocation6 + $0xa8] ss:$12 sps:$4 sm:$0xff]   ;;  %v1162_v5 = vld [vmem:[#allocation6 + $0x98] ss:$12 sps:$4 sm:$0xff]   ;;  %v103_v19 = vunpack.c.l.s8.bf16 %v1385_v18  ;;  %v104_v37 = vunpack.c.h.s8.bf16 %v1385_v18 }
  0x39   :  { %1155 = vset.pattern.permute.xlu1 %v1314_v0  ;;  %283 = vmatprep.subr.bf16.mxu0 %v1156_v1  ;;  %v1160_v4 = vld [vmem:[#allocation6 + $0x94] ss:$12 sps:$4 sm:$0xff]   ;;  %v1163_v6 = vld [vmem:[#allocation6 + $0x90] ss:$12 sps:$4 sm:$0xff]   ;;  %v1167_v9 = vld [vmem:[#allocation6 + $0x78] ss:$12 sps:$4 sm:$0xff]  }
  0x3a   :  { %1014 = vmatprep.subr.bf16.mxu1 %v1158_v2  ;;  %284 = vmatpush1.bf16.msra.mxu0 %v1159_v3  ;;  %v1164_v7 = vld [vmem:[#allocation6 + $0x7c] ss:$12 sps:$4 sm:$0xff]   ;;  %v1166_v8 = vld [vmem:[#allocation6 + $0x80] ss:$12 sps:$4 sm:$0xff]   ;;  %v1168_v10 = vld [vmem:[#allocation6 + $0x64] ss:$12 sps:$4 sm:$0xff]  }
  0x3b   :  { %1015 = vmatpush3.bf16.msra.mxu1 %v1158_v2  ;;  %285 = vmatprep.subr.bf16.mxu0 %v1160_v4  ;;  %v1170_v11 = vld [vmem:[#allocation6 + $0x68] ss:$12 sps:$4 sm:$0xff]   ;;  %v1171_v12 = vld [vmem:[#allocation6 + $0x60] ss:$12 sps:$4 sm:$0xff]   ;;  %v1174_v14 = vld [vmem:[#allocation6 + $0x50] ss:$12 sps:$4 sm:$0xff]  }
  0x3c   :  { %1016 = vmatprep.subr.bf16.mxu1 %v1162_v5  ;;  %v1172_v13 = vld [vmem:[#allocation6 + $0x4c] ss:$12 sps:$4 sm:$0xff]   ;;  %v1175_v15 = vld [vmem:[#allocation6 + $0x48] ss:$12 sps:$4 sm:$0xff]   ;;  %v424_v20 = vld [vmem:[%s1444_s1] sm:$0xff]  ;;  %1030 = vmatprep.mubr.bf16.mxu1 %v103_v19  ;;  %s1315_s16 = smov [#allocation11]  }
  0x3d   :  { %v1176_v16 = vld [vmem:[#allocation6 + $0x34] ss:$12 sps:$4 sm:$0xff]   ;;  %v1178_v17 = vld [vmem:[#allocation6 + $0x38] ss:$12 sps:$4 sm:$0xff]   ;;  %v425_v21 = vld [vmem:[%s1444_s1 + $0x8] sm:$0xff]  ;;  %v428_v23 = vmax.f32 %v424_v20, 1.0 }
  0x3e   :  { %286 = vmatpush1.bf16.msra.mxu0 %v1163_v6  ;;  %v1179_v22 = vld [vmem:[#allocation6 + $0x30] ss:$12 sps:$4 sm:$0xff]   ;;  %v429_v24 = vmax.f32 %v425_v21, 1.0  ;;  %v1182_v26 = vld [vmem:[#allocation6 + $0x20] ss:$12 sps:$4 sm:$0xff]   ;;  %vm440_vm0 = vcmp.gt.f32.partialorder %v424_v20, 0.0 }
  0x3f   :  { %1017 = vmatpush3.bf16.msra.mxu1 %v1162_v5  ;;  %287 = vmatprep.subr.bf16.mxu0 %v1164_v7  ;;  %v1180_v25 = vld [vmem:[#allocation6 + $0x1c] ss:$12 sps:$4 sm:$0xff]   ;;  %v426_v27 = vld [vmem:[%s1444_s1 + $0x10] sm:$0xff]  ;;  %1188 = vrcp.f32 %v428_v23  ;;  %v1183_v28 = vld [vmem:[#allocation6 + $0x18] ss:$12 sps:$4 sm:$0xff]   ;;  %vm441_vm1 = vcmp.gt.f32.partialorder %v425_v21, 0.0 }
  0x40   :  { %1018 = vmatprep.subr.bf16.mxu1 %v1166_v8  ;;  %1190 = vrcp.f32 %v429_v24  ;;  %v430_v29 = vmax.f32 %v426_v27, 1.0  ;;  %v1184_v30 = vld [vmem:[#allocation6 + $0x4] ss:$12 sps:$4 sm:$0xff]   ;;  %v1186_v31 = vld [vmem:[#allocation6 + $0x8] ss:$12 sps:$4 sm:$0xff]   ;;  %v1400_v32 = vld [vmem:[%s1444_s1 + $0x18] sm:$0xff] }
  0x41   :  { %v1187_v33 = vld [vmem:[#allocation6] ss:$12 sps:$4 sm:$0xff]   ;;  %v431_v34 = vmax.f32 %v1400_v32, 1.0  ;;  %v563_v35 = vld [vmem:[#allocation8 + $0xf8] sm:$0xff]  ;;  %v562_v40 = vld [vmem:[#allocation8 + $0xf0] sm:$0xff]  ;;  %v488_v44 = vsel %vm440_vm0, 1, %v1314_v0 }
  0x42   :  { %288 = vmatpush1.bf16.msra.mxu0 %v1167_v9  ;;  %1192 = vrcp.f32 %v430_v29  ;;  %v579_v36 = vld [vmem:[#allocation8 + $0x178] sm:$0xff]  ;;  %v546_v42 = vld [vmem:[#allocation8 + $0x70] sm:$0xff]  ;;  %v561_v45 = vld [vmem:[#allocation8 + $0xe8] sm:$0xff]  ;;  %v489_v46 = vsel %vm441_vm1, 1, %v1314_v0  ;;  %vm442_vm2 = vcmp.gt.f32.partialorder %v426_v27, 0.0  ;;  %vm443_vm3 = vcmp.gt.f32.partialorder %v1400_v32, 0.0 }
  0x43   :  { %1019 = vmatpush3.bf16.msra.mxu1 %v1166_v8  ;;  %289 = vmatprep.subr.bf16.mxu0 %v1168_v10  ;;  %1194 = vrcp.f32 %v431_v34  ;;  %v547_v38 = vld [vmem:[#allocation8 + $0x78] sm:$0xff]  ;;  %v578_v43 = vld [vmem:[#allocation8 + $0x170] sm:$0xff]  ;;  %v545_v47 = vld [vmem:[#allocation8 + $0x68] sm:$0xff]  ;;  %v490_v52 = vsel %vm442_vm2, 1, %v1314_v0  ;;  %v491_v58 = vsel %vm443_vm3, 1, %v1314_v0  ;;  %s878_s17 = sshll.u32 %s1315_s16, 4  ;;  %s879_s17 = int_to_ptr.vmem [resolvable:$true] %s878_s17 }
  0x44   :  { %1020 = vmatprep.subr.bf16.mxu1 %v1170_v11  ;;  %v560_v48 = vld [vmem:[#allocation8 + $0xe0] sm:$0xff]  ;;  %v577_v49 = vld [vmem:[#allocation8 + $0x168] sm:$0xff]  ;;  %v559_v53 = vld [vmem:[#allocation8 + $0xd8] sm:$0xff]  ;;  %s1276_s18 = scalar_lea.vmem %s879_s17, 512  ;;  %p1281_p7 = scmp.lt.s32.totalorder %s879_s17, %s879_s17 }
  0x45   :  { %v544_v51 = vld [vmem:[#allocation8 + $0x60] sm:$0xff]  ;;  %v543_v54 = vld [vmem:[#allocation8 + $0x58] sm:$0xff]  ;;  %v558_v56 = vld [vmem:[#allocation8 + $0xd0] sm:$0xff]  ;;  %p1277_p6 = scmp.ne.s32.totalorder %s879_s17, %s1276_s18  ;;  %p1282_p8 = scmp.lt.s32.totalorder %s1276_s18, %s1276_s18 }
  0x46   :  { %290 = vmatpush1.bf16.msra.mxu0 %v1171_v12  ;;  %v576_v55 = vld [vmem:[#allocation8 + $0x160] sm:$0xff]  ;;  %v542_v59 = vld [vmem:[#allocation8 + $0x50] sm:$0xff]  ;;  %v575_v60 = vld [vmem:[#allocation8 + $0x158] sm:$0xff] }
  0x47   :  { %1021 = vmatpush3.bf16.msra.mxu1 %v1170_v11  ;;  %291 = vmatprep.subr.bf16.mxu0 %v1172_v13  ;;  %v557_v61 = vld [vmem:[#allocation8 + $0xc8] sm:$0xff]  ;;  %v574_v63 = vld [vmem:[#allocation8 + $0x150] sm:$0xff]  ;;  %v556_v1 = vld [vmem:[#allocation8 + $0xc0] sm:$0xff]  ;;  %p1283_p9 = por %p1282_p8, %p1281_p7 }
  0x48   :  { %1022 = vmatprep.subr.bf16.mxu1 %v1174_v14  ;;  %v541_v62 = vld [vmem:[#allocation8 + $0x48] sm:$0xff]  ;;  %v540_v2 = vld [vmem:[#allocation8 + $0x40] sm:$0xff]  ;;  %v555_v3 = vld [vmem:[#allocation8 + $0xb8] sm:$0xff] }
  0x49   :  { %v539_v4 = vld [vmem:[#allocation8 + $0x38] sm:$0xff]  ;;  %v572_v5 = vld [vmem:[#allocation8 + $0x140] sm:$0xff]  ;;  %v554_v6 = vld [vmem:[#allocation8 + $0xb0] sm:$0xff]  ;;  %p1284_p10 = pnand %p1283_p9, %p1277_p6 }
  0x4a   :  { %292 = vmatpush1.bf16.msra.mxu0 %v1175_v15  ;;  %v538_v7 = vld [vmem:[#allocation8 + $0x30] sm:$0xff]  ;;  %v571_v8 = vld [vmem:[#allocation8 + $0x138] sm:$0xff]  ;;  %v553_v9 = vld [vmem:[#allocation8 + $0xa8] sm:$0xff] }
  0x4b   :  { %1023 = vmatpush3.bf16.msra.mxu1 %v1174_v14  ;;  %293 = vmatprep.subr.bf16.mxu0 %v1176_v16  ;;  %v537_v10 = vld [vmem:[#allocation8 + $0x28] sm:$0xff]  ;;  %v570_v11 = vld [vmem:[#allocation8 + $0x130] sm:$0xff]  ;;  %v552_v12 = vld [vmem:[#allocation8 + $0xa0] sm:$0xff] }
  0x4c   :  { %1024 = vmatprep.subr.bf16.mxu1 %v1178_v17  ;;  %v1189_v39 = vpop.eup %1188  ;;  %v536_v13 = vld [vmem:[#allocation8 + $0x20] sm:$0xff]  ;;  %v569_v14 = vld [vmem:[#allocation8 + $0x128] sm:$0xff]  ;;  %v551_v15 = vld [vmem:[#allocation8 + $0x98] sm:$0xff] }
  0x4d   :  { %v1191_v41 = vpop.eup %1190  ;;  %458 = vperm.xlu0 %1154, %v1189_v39   ;;  %v535_v16 = vld [vmem:[#allocation8 + $0x18] sm:$0xff]  ;;  %v550_v18 = vld [vmem:[#allocation8 + $0x90] sm:$0xff]  ;;  %v549_v21 = vld [vmem:[#allocation8 + $0x88] sm:$0xff] }
  0x4e   :  { %294 = vmatpush1.bf16.msra.mxu0 %v1179_v22  ;;  %463 = vperm.xlu1 %1155, %v1191_v41   ;;  %v567_v20 = vld [vmem:[#allocation8 + $0x118] sm:$0xff]  ;;  %v533_v22 = vld [vmem:[#allocation8 + $0x8] sm:$0xff]  ;;  %v566_v23 = vld [vmem:[#allocation8 + $0x110] sm:$0xff] }
  0x4f   :  { %1025 = vmatpush3.bf16.msra.mxu1 %v1178_v17  ;;  %295 = vmatprep.subr.bf16.mxu0 %v1180_v25  ;;  %v1193_v50 = vpop.eup %1192  ;;  %v568_v17 = vld [vmem:[#allocation8 + $0x120] sm:$0xff]  ;;  %v413_v41 = vld [vmem:[#allocation3 + $0x8] sm:$0xff] }
  0x50   :  { %1026 = vmatprep.subr.bf16.mxu1 %v1182_v26  ;;  %v1195_v57 = vpop.eup %1194  ;;  %v548_v24 = vld [vmem:[#allocation8 + $0x80] sm:$0xff] }
  0x51   :  { %493 = vperm.xlu0 %1154, %v488_v44   ;;  %v532_v25 = vld [vmem:[#allocation8] sm:$0xff] }
  0x52   :  { %296 = vmatpush1.bf16.msra.mxu0 %v1183_v28  ;;  %496 = vperm.xlu1 %1155, %v489_v46   ;;  %v564_v27 = vld [vmem:[#allocation8 + $0x100] sm:$0xff]  ;;  %v1410_v28 = vld [vmem:[#allocation9 + $0x78] sm:$0xff] }
  0x53   :  { %1027 = vmatpush3.bf16.msra.mxu1 %v1182_v26  ;;  %297 = vmatprep.subr.bf16.mxu0 %v1184_v30  ;;  %v565_v26 = vld [vmem:[#allocation8 + $0x108] sm:$0xff] }
  0x54   :  { %1028 = vmatprep.subr.bf16.mxu1 %v1186_v31 }
  0x55   :  { %468 = vperm.xlu0 %1154, %v1193_v50  }
  0x56   :  { %298 = vmatpush1.bf16.msra.mxu0 %v1187_v33  ;;  %499 = vperm.xlu1 %1155, %v490_v52  }
  0x57   :  { %1029 = vmatpush3.bf16.msra.mxu1 %v1186_v31  ;;  %930 = vmatprep.subr.mxu0 %v563_v35 }
  0x58   :  { %1034 = vmatprep.subr.mxu1 %v579_v36 }
  0x59   :  { %316 = vmatmul.mubr.bf16.vlgmr.msra.gmra.mxu0 %v103_v19  ;;  %473 = vperm.xlu0 %1154, %v1195_v57   ;;  %v534_v19 = vld [vmem:[#allocation8 + $0x10] sm:$0xff]  ;;  %v417_v57 = vld [vmem:[#allocation3 + $0x28] sm:$0xff] }
  0x5a   :  { %1031 = vmatmul.mubr.bf16.vlgmr.msra.gmra.mxu1 %v104_v37  ;;  %325 = vmatprep.mubr.bf16.mxu0 %v1314_v0  ;;  %v573_v0 = vld [vmem:[#allocation8 + $0x148] sm:$0xff] }
  0x5b   :  { %931 = vmatpush3.msra.mxu0 %v547_v38  ;;  %1035 = vmatpush3.msra.mxu1 %v579_v36 }
  0x5c   :  { %932 = vmatprep.subr.mxu0 %v562_v40  ;;  %1036 = vmatprep.subr.mxu1 %v578_v43 }
  0x5d   :  { %933 = vmatpush3.msra.mxu0 %v546_v42  ;;  %1037 = vmatpush3.msra.mxu1 %v578_v43  ;;  %v414_v42 = vld [vmem:[#allocation3 + $0x10] sm:$0xff] }
  0x5e   :  { %934 = vmatprep.subr.mxu0 %v561_v45  ;;  %1038 = vmatprep.subr.mxu1 %v577_v49 }
  0x5f   :  { %935 = vmatpush3.msra.mxu0 %v545_v47  ;;  %1039 = vmatpush3.msra.mxu1 %v577_v49 }
  0x60   :  { %936 = vmatprep.subr.mxu0 %v560_v48  ;;  %1040 = vmatprep.subr.mxu1 %v576_v55 }
  0x61   :  { %326 = vmatmul.mubr.bf16.gmra.mxu0 %v104_v37  ;;  %1041 = vmatpush3.msra.mxu1 %v576_v55  ;;  %v412_v37 = vld [vmem:[#allocation3] sm:$0xff] }
  0x62   :  { %937 = vmatpush3.msra.mxu0 %v544_v51  ;;  %502 = vperm.xlu1 %1155, %v491_v58  }
  0x63   :  { %938 = vmatprep.subr.mxu0 %v559_v53  ;;  %1042 = vmatprep.subr.mxu1 %v575_v60  ;;  %v415_v53 = vld [vmem:[#allocation3 + $0x18] sm:$0xff] }
  0x64   :  { %939 = vmatpush3.msra.mxu0 %v543_v54  ;;  %1043 = vmatpush3.msra.mxu1 %v575_v60  ;;  %v420_v54 = vld [vmem:[#allocation3 + $0x40] sm:$0xff] }
  0x65   :  { %940 = vmatprep.subr.mxu0 %v558_v56  ;;  %1044 = vmatprep.subr.mxu1 %v574_v63  ;;  %v416_v60 = vld [vmem:[#allocation3 + $0x20] sm:$0xff] }
  0x66   :  { %941 = vmatpush3.msra.mxu0 %v542_v59  ;;  %1045 = vmatpush3.msra.mxu1 %v574_v63 }
  0x67   :  { %942 = vmatprep.subr.mxu0 %v557_v61  ;;  %1046 = vmatprep.subr.mxu1 %v573_v0 }
  0x68   :  { %943 = vmatpush3.msra.mxu0 %v541_v62  ;;  %1047 = vmatpush3.msra.mxu1 %v573_v0 }
  0x69   :  { %944 = vmatprep.subr.mxu0 %v556_v1  ;;  %1048 = vmatprep.subr.mxu1 %v572_v5 }
  0x6a   :  { %945 = vmatpush3.msra.mxu0 %v540_v2  ;;  %1049 = vmatpush3.msra.mxu1 %v572_v5  ;;  %v423_v5 = vld [vmem:[#allocation3 + $0x58] sm:$0xff] }
  0x6b   :  { %946 = vmatprep.subr.mxu0 %v555_v3  ;;  %1050 = vmatprep.subr.mxu1 %v571_v8 }
  0x6c   :  { %947 = vmatpush3.msra.mxu0 %v539_v4  ;;  %1051 = vmatpush3.msra.mxu1 %v571_v8 }
  0x6d   :  { %948 = vmatprep.subr.mxu0 %v554_v6  ;;  %1052 = vmatprep.subr.mxu1 %v570_v11  ;;  %v775_v6 = vld [vmem:[#allocation9 + $0x70] sm:$0xff] }
  0x6e   :  { %949 = vmatpush3.msra.mxu0 %v538_v7  ;;  %1053 = vmatpush3.msra.mxu1 %v570_v11 }
  0x6f   :  { %950 = vmatprep.subr.mxu0 %v553_v9  ;;  %1054 = vmatprep.subr.mxu1 %v569_v14 }
  0x70   :  { %951 = vmatpush3.msra.mxu0 %v537_v10  ;;  %1055 = vmatpush3.msra.mxu1 %v569_v14  ;;  %v418_v10 = vld [vmem:[#allocation3 + $0x30] sm:$0xff]  ;;  %v419_v14 = vld [vmem:[#allocation3 + $0x38] sm:$0xff] }
  0x71   :  { %952 = vmatprep.subr.mxu0 %v552_v12  ;;  %1056 = vmatprep.subr.mxu1 %v568_v17 }
  0x72   :  { %953 = vmatpush3.msra.mxu0 %v536_v13  ;;  %1057 = vmatpush3.msra.mxu1 %v568_v17 }
  0x73   :  { %954 = vmatprep.subr.mxu0 %v551_v15  ;;  %1058 = vmatprep.subr.mxu1 %v567_v20 }
  0x74   :  { %955 = vmatpush3.msra.mxu0 %v535_v16  ;;  %1059 = vmatpush3.msra.mxu1 %v567_v20 }
  0x75   :  { %956 = vmatprep.subr.mxu0 %v550_v18  ;;  %1060 = vmatprep.subr.mxu1 %v566_v23 }
  0x76   :  { %957 = vmatpush3.msra.mxu0 %v534_v19  ;;  %1061 = vmatpush3.msra.mxu1 %v566_v23 }
  0x77   :  { %958 = vmatprep.subr.mxu0 %v549_v21  ;;  %1062 = vmatprep.subr.mxu1 %v565_v26  ;;  %v774_v21 = vld [vmem:[#allocation9 + $0x68] sm:$0xff] }
  0x78   :  { %959 = vmatpush3.msra.mxu0 %v533_v22  ;;  %1063 = vmatpush3.msra.mxu1 %v565_v26 }
  0x79   :  { %960 = vmatprep.subr.mxu0 %v548_v24  ;;  %1064 = vmatprep.subr.mxu1 %v564_v27  ;;  %v421_v24 = vld [vmem:[#allocation3 + $0x48] sm:$0xff] }
  0x7a   :  { %961 = vmatpush3.msra.mxu0 %v532_v25  ;;  %1065 = vmatpush3.msra.mxu1 %v564_v27 }
  0x7b   :  { %1072 = vmatprep.subr.mxu0 %v1410_v28  ;;  %1110 = vmatprep.subr.mxu1 %v1410_v28 }
  0xc8   :  { %v459_v29 = vpop.permute.xlu0 %458 }
  0xc9   :  { %v464_v30 = vpop.permute.xlu1 %463 }
  0xcc   :  { %v494_v31 = vpop.permute.xlu0 %493 }
  0xcd   :  { %v497_v32 = vpop.permute.xlu1 %496  ;;  %vm504_vm4 = vcmp.eq.s32.totalorder %v494_v31, 1 }
  0xce   :  { %vm505_vm6 = vcmp.eq.s32.totalorder %v497_v32, 1 }
  0xd0   :  { %v469_v33 = vpop.permute.xlu0 %468 }
  0xd1   :  { %v1414_v36 = vpop.permute.xlu1 %499 }
  0xd2   :  { %vm506_vm5 = vcmp.eq.s32.totalorder %v1414_v36, 1  ;;  %v772_v36 = vld [vmem:[#allocation9 + $0x58] sm:$0xff] }
  0xd4   :  { %v474_v49 = vpop.permute.xlu0 %473 }
  0xdd   :  { %v503_v62 = vpop.permute.xlu1 %502 }
  0xde   :  { %vm507_vm7 = vcmp.eq.s32.totalorder %v503_v62, 1 }
 0x119   :  { %v317_v34 = vpop.f32.mrf.mxu0 }
 0x11a   :  { %v1032_v35 = vpop.f32.mrf.mxu1  ;;  %v476_v38 = vmul.f32 %v459_v29, %v317_v34 }
 0x11b   :  { %v319_v39 = vpop.f32.mrf.mxu0  ;;  %v484_v46 = vmul.f32 %v1032_v35, %v469_v33 }
 0x11c   :  { %v370_v40 = vpop.f32.mrf.mxu1  ;;  %v477_v43 = vmul.f32 %v459_v29, %v319_v39  ;;  %v508_v45 = vsel %vm504_vm4, %v476_v38, %v412_v37  ;;  %v770_v38 = vld [vmem:[#allocation9 + $0x48] sm:$0xff]  ;;  %v769_v39 = vld [vmem:[#allocation9 + $0x40] sm:$0xff] }
 0x11d   :  { %v478_v44 = vmul.f32 %v459_v29, %v370_v40  ;;  %v321_v47 = vpop.f32.mrf.mxu0  ;;  %v520_v61 = vadd.f32 %v508_v45, %v412_v37  ;;  %v516_v4 = vsel %vm506_vm5, %v484_v46, %v420_v54  ;;  %v422_v29 = vld [vmem:[#allocation3 + $0x50] sm:$0xff]  ;;  %v768_v40 = vld [vmem:[#allocation9 + $0x38] sm:$0xff]  ;;  %v762_v46 = vld [vmem:[#allocation9 + $0x8] sm:$0xff] }
 0x11e   :  { %v1033_v48 = vpop.f32.mrf.mxu1  ;;  %v479_v50 = vmul.f32 %v464_v30, %v321_v47  ;;  %v509_v51 = vsel %vm504_vm4, %v477_v43, %v413_v41  ;;  %v528_v17 = vadd.f32 %v516_v4, %v420_v54  ;;  %v765_v43 = vld [vmem:[#allocation9 + $0x20] sm:$0xff]  ;;  %v763_v45 = vld [vmem:[#allocation9 + $0x10] sm:$0xff] }
 0x11f   :  { %v510_v52 = vsel %vm504_vm4, %v478_v44, %v414_v42  ;;  %v323_v55 = vpop.f32.mrf.mxu0  ;;  %v521_v58 = vadd.f32 %v509_v51, %v413_v41  ;;  %v487_v63 = vmul.f32 %v1033_v48, %v474_v49  ;;  %v767_v41 = vld [vmem:[#allocation9 + $0x30] sm:$0xff]  ;;  %v764_v44 = vld [vmem:[#allocation9 + $0x18] sm:$0xff]  ;;  %v761_v47 = vld [vmem:[#allocation9] sm:$0xff] }
 0x120   :  { %v373_v56 = vpop.f32.mrf.mxu1  ;;  %v522_v59 = vadd.f32 %v510_v52, %v414_v42  ;;  %v480_v1 = vmul.f32 %v464_v30, %v323_v55  ;;  %v511_v3 = vsel %vm505_vm6, %v479_v50, %v415_v53  ;;  %v766_v42 = vld [vmem:[#allocation9 + $0x28] sm:$0xff]  ;;  %v918_v50 = vld [vmem:[%s1448_s5] ss:$0 sm:$0xff] }
 0x121   :  { %v481_v2 = vmul.f32 %v464_v30, %v373_v56  ;;  %v327_v0 = vpop.f32.mrf.mxu0  ;;  %651 = vmatprep.mubr.f32.mxu0 %v521_v58  ;;  %v523_v16 = vadd.f32 %v511_v3, %v415_v53  ;;  %v519_v18 = vsel %vm507_vm7, %v487_v63, %v423_v5 }
 0x122   :  { %1066 = vmatprep.mubr.f32.mxu1 %v522_v59  ;;  %v482_v8 = vmul.f32 %v469_v33, %v327_v0  ;;  %652 = vmatmul.mubr.f32.vlgmr.msra.gmra.mxu0 %v520_v61  ;;  %v512_v9 = vsel %vm505_vm6, %v480_v1, %v416_v60  ;;  %v531_v27 = vadd.f32 %v519_v18, %v423_v5 }
 0x123   :  { %v513_v7 = vsel %vm505_vm6, %v481_v2, %v417_v57  ;;  %v329_v12 = vpop.f32.mrf.mxu0  ;;  %v524_v13 = vadd.f32 %v512_v9, %v416_v60  ;;  %1073 = vmatpush3.msra.mxu0 %v1410_v28 }
 0x124   :  { %v525_v11 = vadd.f32 %v513_v7, %v417_v57  ;;  %v483_v15 = vmul.f32 %v469_v33, %v329_v12  ;;  %1074 = vmatprep.subr.mxu0 %v775_v6  ;;  %v514_v20 = vsel %vm506_vm5, %v482_v8, %v418_v10  ;;  %v773_v33 = vld [vmem:[#allocation9 + $0x60] sm:$0xff] }
 0x125   :  { %v331_v19 = vpop.f32.mrf.mxu0  ;;  %656 = vmatprep.mubr.f32.mxu0 %v524_v13  ;;  %1075 = vmatpush3.msra.mxu0 %v775_v6  ;;  %v526_v31 = vadd.f32 %v514_v20, %v418_v10  ;;  %v919_v13 = vld [vmem:[%s1450_s7] ss:$0 sm:$0xff] }
 0x126   :  { %1067 = vmatmul.mubr.f32.vlgmr.msra.gmra.mxu1 %v525_v11  ;;  %v485_v22 = vmul.f32 %v474_v49, %v331_v19  ;;  %657 = vmatmul.mubr.f32.gmra.mxu0 %v523_v16  ;;  %v515_v23 = vsel %vm506_vm5, %v483_v15, %v419_v14 }
 0x127   :  { %1069 = vmatprep.mubr.f32.mxu1 %v528_v17  ;;  %v333_v25 = vpop.f32.mrf.mxu0  ;;  %v527_v26 = vadd.f32 %v515_v23, %v419_v14  ;;  %1126 = vmatpush3.msra.mxu1 %v1410_v28  ;;  %v771_v28 = vld [vmem:[#allocation9 + $0x50] sm:$0xff] }
 0x128   :  { %v486_v30 = vmul.f32 %v474_v49, %v333_v25  ;;  %1076 = vmatprep.subr.mxu0 %v774_v21  ;;  %1111 = vmatprep.subr.mxu1 %v775_v6  ;;  %v517_v32 = vsel %vm507_vm7, %v485_v22, %v421_v24 }
 0x129   :  { %661 = vmatprep.mubr.f32.mxu0 %v527_v26  ;;  %1127 = vmatpush3.msra.mxu1 %v775_v6  ;;  %v529_v37 = vadd.f32 %v517_v32, %v421_v24 }
 0x12a   :  { %1070 = vmatmul.mubr.f32.gmra.mxu1 %v531_v27  ;;  %662 = vmatmul.mubr.f32.gmra.mxu0 %v526_v31  ;;  %v518_v34 = vsel %vm507_vm7, %v486_v30, %v422_v29 }
 0x12b   :  { %v530_v35 = vadd.f32 %v518_v34, %v422_v29  ;;  %1077 = vmatpush3.msra.mxu0 %v774_v21  ;;  %1112 = vmatprep.subr.mxu1 %v774_v21 }
 0x12c   :  { %1078 = vmatprep.subr.mxu0 %v773_v33  ;;  %1128 = vmatpush3.msra.mxu1 %v774_v21 }
 0x12d   :  { %666 = vmatprep.mubr.f32.mxu0 %v530_v35  ;;  %1079 = vmatpush3.msra.mxu0 %v773_v33 }
 0x12e   :  { %667 = vmatmul.mubr.f32.gmra.mxu0 %v529_v37  ;;  %1080 = vmatprep.subr.mxu0 %v772_v36 }
 0x12f   :  { %1081 = vmatpush3.msra.mxu0 %v772_v36  ;;  %1113 = vmatprep.subr.mxu1 %v773_v33 }
 0x130   :  { %1082 = vmatprep.subr.mxu0 %v771_v28  ;;  %1129 = vmatpush3.msra.mxu1 %v773_v33 }
 0x131   :  { %1083 = vmatpush3.msra.mxu0 %v771_v28  ;;  %1114 = vmatprep.subr.mxu1 %v772_v36 }
 0x132   :  { %1084 = vmatprep.subr.mxu0 %v770_v38  ;;  %1130 = vmatpush3.msra.mxu1 %v772_v36 }
 0x133   :  { %1085 = vmatpush3.msra.mxu0 %v770_v38  ;;  %1115 = vmatprep.subr.mxu1 %v771_v28 }
 0x134   :  { %1086 = vmatprep.subr.mxu0 %v769_v39  ;;  %1131 = vmatpush3.msra.mxu1 %v771_v28 }
 0x135   :  { %1087 = vmatpush3.msra.mxu0 %v769_v39  ;;  %1116 = vmatprep.subr.mxu1 %v770_v38 }
 0x136   :  { %1088 = vmatprep.subr.mxu0 %v768_v40  ;;  %1132 = vmatpush3.msra.mxu1 %v770_v38 }
 0x137   :  { %1089 = vmatpush3.msra.mxu0 %v768_v40  ;;  %1117 = vmatprep.subr.mxu1 %v769_v39 }
 0x138   :  { %1133 = vmatpush3.msra.mxu1 %v769_v39  ;;  %1090 = vmatprep.subr.mxu0 %v767_v41 }
 0x139   :  { %1118 = vmatprep.subr.mxu1 %v768_v40  ;;  %1091 = vmatpush3.msra.mxu0 %v767_v41 }
 0x13a   :  { %1134 = vmatpush3.msra.mxu1 %v768_v40  ;;  %1092 = vmatprep.subr.mxu0 %v766_v42 }
 0x13b   :  { %1119 = vmatprep.subr.mxu1 %v767_v41  ;;  %1093 = vmatpush3.msra.mxu0 %v766_v42 }
 0x13c   :  { %1135 = vmatpush3.msra.mxu1 %v767_v41  ;;  %1094 = vmatprep.subr.mxu0 %v765_v43 }
 0x13d   :  { %1120 = vmatprep.subr.mxu1 %v766_v42  ;;  %1095 = vmatpush3.msra.mxu0 %v765_v43 }
 0x13e   :  { %1136 = vmatpush3.msra.mxu1 %v766_v42  ;;  %1096 = vmatprep.subr.mxu0 %v764_v44 }
 0x13f   :  { %1121 = vmatprep.subr.mxu1 %v765_v43  ;;  %1097 = vmatpush3.msra.mxu0 %v764_v44 }
 0x140   :  { %1137 = vmatpush3.msra.mxu1 %v765_v43  ;;  %1098 = vmatprep.subr.mxu0 %v763_v45 }
 0x141   :  { %1122 = vmatprep.subr.mxu1 %v764_v44  ;;  %1099 = vmatpush3.msra.mxu0 %v763_v45 }
 0x142   :  { %1138 = vmatpush3.msra.mxu1 %v764_v44  ;;  %1100 = vmatprep.subr.mxu0 %v762_v46 }
 0x143   :  { %1123 = vmatprep.subr.mxu1 %v763_v45  ;;  %1101 = vmatpush3.msra.mxu0 %v762_v46 }
 0x144   :  { %1139 = vmatpush3.msra.mxu1 %v763_v45  ;;  %1102 = vmatprep.subr.mxu0 %v761_v47 }
 0x145   :  { %1124 = vmatprep.subr.mxu1 %v762_v46  ;;  %1103 = vmatpush3.msra.mxu0 %v761_v47 }
 0x146   :  { %1140 = vmatpush3.msra.mxu1 %v762_v46 }
 0x147   :  { %1125 = vmatprep.subr.mxu1 %v761_v47 }
 0x148   :  { %1141 = vmatpush3.msra.mxu1 %v761_v47 }
 0x1e2   :  { %v962_v48 = vpop.f32.mrf.mxu0 }
 0x1e4   :  { %v963_v49 = vpop.f32.mrf.mxu0 }
 0x1e5   :  { %v964_v51 = vadd.f32 %v963_v49, %v962_v48 }
 0x1e6   :  { %v1068_v52 = vpop.f32.mrf.mxu1  ;;  %v965_v53 = vpop.f32.mrf.mxu0 }
 0x1e7   :  { %v654_v54 = vadd.f32 %v964_v51, %v918_v50 }
 0x1e8   :  { %v738_v55 = vpop.f32.mrf.mxu1  ;;  %v966_v56 = vpop.f32.mrf.mxu0 }
 0x1e9   :  { %v739_v57 = vadd.f32 %v738_v55, %v654_v54  ;;  %v967_v58 = vadd.f32 %v966_v56, %v965_v53 }
 0x1ea   :  { %v968_v59 = vpop.f32.mrf.mxu0  ;;  %v1071_v62 = vpop.f32.mrf.mxu1 }
 0x1eb   :  { %v757_v60 = vmax.f32 %v739_v57, 0.0  ;;  %v659_v61 = vadd.f32 %v967_v58, %v918_v50 }
 0x1ec   :  { %v969_v63 = vpop.f32.mrf.mxu0  ;;  %v748_v5 = vpop.f32.mrf.mxu1 }
 0x1ed   :  { %v744_v1 = vadd.f32 %v1068_v52, %v659_v61  ;;  %v970_v2 = vadd.f32 %v969_v63, %v968_v59  ;;  %1104 = vmatprep.mubr.f32.mxu0 %v757_v60 }
 0x1ee   :  { %v971_v0 = vpop.f32.mrf.mxu0 }
 0x1ef   :  { %v758_v3 = vmax.f32 %v744_v1, 0.0  ;;  %v664_v4 = vadd.f32 %v970_v2, %v918_v50 }
 0x1f0   :  { %v972_v6 = vpop.f32.mrf.mxu0 }
 0x1f1   :  { %v973_v7 = vadd.f32 %v972_v6, %v971_v0  ;;  %1105 = vmatmul.mubr.f32.vlgmr.msra.gmra.mxu0 %v758_v3  ;;  %v749_v8 = vadd.f32 %v748_v5, %v664_v4 }
 0x1f3   :  { %v669_v9 = vadd.f32 %v973_v7, %v918_v50  ;;  %v759_v10 = vmax.f32 %v749_v8, 0.0 }
 0x1f5   :  { %v754_v11 = vadd.f32 %v1071_v62, %v669_v9  ;;  %1107 = vmatprep.mubr.f32.mxu1 %v759_v10 }
 0x1f7   :  { %v760_v12 = vmax.f32 %v754_v11, 0.0 }
 0x1f9   :  { %1108 = vmatmul.mubr.f32.vlgmr.msra.gmra.mxu1 %v760_v12 }
 0x2b1   :  { %v1106_v14 = vpop.f32.mrf.mxu0 }
 0x2b2   :  { %v856_v15 = vadd.f32 %v1106_v14, %v919_v13 }
 0x2b3   :  { %v850_v16 = vpop.f32.mrf.mxu0 }
 0x2b4   :  { %870 = vst [vmem:[#allocation11 + $0x8] sm:$0xff] %v856_v15  ;;  %v851_v17 = vadd.f32 %v919_v13, %v850_v16 }
 0x2b6   :  { %869 = vst [vmem:[#allocation11] sm:$0xff] %v851_v17 }
 0x2b9   :  { %v1109_v18 = vpop.f32.mrf.mxu1 }
 0x2ba   :  { %v866_v19 = vadd.f32 %v1109_v18, %v919_v13 }
 0x2bb   :  { %v860_v20 = vpop.f32.mrf.mxu1 }
 0x2bc   :  { %872 = vst [vmem:[#allocation11 + $0x18] sm:$0xff] %v866_v19  ;;  %v861_v21 = vadd.f32 %v919_v13, %v860_v20 }
 0x2be   :  { %871 = vst [vmem:[#allocation11 + $0x10] sm:$0xff] %v861_v21 }
 0x2bf   :  { %1287 = shalt.err (!%p1284_p10)
}
 0x2c0   :  { %884 = dma.vmem_to_hbm [thread:$0]  %s879_s17, 512, %s1451_s8, [#allocation5], %s1311_s21, %s1311_s21, %s1312_s22  }
 0x2c1   :  { %1302 = dma.done.wait [#allocation5], 512  }
 0x2c2   :  { %1303 = vsyncadd [#allocation5], 4294966784 }
 0x2c3   :  { %888 = vsyncpa [#allocation4], 1 }
 0x2c4   :  { %889 = vsyncpa [#allocation7], 1 }
 0x2c5   :  { %890 = vsyncpa [#allocation10], 1 }
 0x2c6   :  { %891 = vsyncpa [#allocation5], 1 }

</bundles_post_ra>
